<compile_context>
chip_gen: v5e
topology: v5e:2x2
jax: 0.10.0
libtpu: 0.0.40
codegen_flags: <defaults>
</compile_context>

<pallas_src>
import functools

import jax
import jax.numpy as jnp
from jax.experimental import pallas as pl
from jax.experimental.pallas import tpu as pltpu


def _ce_kernel(x_ref, t_ref, loss_ref, m_t, s_t, dot_acc, m_x, s_x, *,
               inv_temp_t, inv_temp_s, c_total, tile_c, need_c_mask):
    """One (row_tile, tile_c) block; class axis is the inner grid dim."""
    ci = pl.program_id(1)

    @pl.when(ci == 0)
    def _():
        m_t[...] = jnp.full_like(m_t, -jnp.inf)
        s_t[...] = jnp.zeros_like(s_t)
        dot_acc[...] = jnp.zeros_like(dot_acc)
        m_x[...] = jnp.full_like(m_x, -jnp.inf)
        s_x[...] = jnp.zeros_like(s_x)

    x = x_ref[...].astype(jnp.float32)
    t = t_ref[...].astype(jnp.float32)
    if inv_temp_s != 1.0:          # static Python check: zero cost when temp == 1
        x = x * inv_temp_s
    if inv_temp_t != 1.0:
        t = t * inv_temp_t

    if need_c_mask:
        # Class-axis grid overhang: mask the tail with where() (kills NaN/Inf
        # from out-of-bounds garbage, unlike a multiply).
        col = jax.lax.broadcasted_iota(jnp.int32, x.shape, 1) + ci * tile_c
        valid = col < c_total
        t = jnp.where(valid, t, -jnp.inf)
        x_lse = jnp.where(valid, x, -jnp.inf)
        x_dot = jnp.where(valid, x, 0.0)
    else:
        x_lse = x
        x_dot = x

    # Online pieces of softmax(target): running max, sum(exp), sum(exp * x).
    m_t_new = jnp.maximum(m_t[...], jnp.max(t, axis=-1, keepdims=True))
    a_t = jnp.exp(m_t[...] - m_t_new)
    e_t = jnp.exp(t - m_t_new)
    s_t[...] = a_t * s_t[...] + jnp.sum(e_t, axis=-1, keepdims=True)
    dot_acc[...] = a_t * dot_acc[...] + jnp.sum(e_t * x_dot, axis=-1, keepdims=True)
    m_t[...] = m_t_new

    # Online logsumexp(x).
    m_x_new = jnp.maximum(m_x[...], jnp.max(x_lse, axis=-1, keepdims=True))
    a_x = jnp.exp(m_x[...] - m_x_new)
    s_x[...] = a_x * s_x[...] + jnp.sum(jnp.exp(x_lse - m_x_new), axis=-1,
                                        keepdims=True)
    m_x[...] = m_x_new

    @pl.when(ci == pl.num_programs(1) - 1)
    def _():
        # loss = logsumexp(x) - sum_c softmax(t)_c * x_c   (exact division)
        loss_ref[...] = (m_x[...] + jnp.log(s_x[...])) - dot_acc[...] / s_t[...]


def _round_up(a, m):
    return -(-a // m) * m


def _round_down(a, m):
    return (a // m) * m


def _vmem_capacity_bytes():
    try:
        return int(pltpu.get_tpu_info().vmem_capacity_bytes)
    except Exception:
        return 64 * 1024 * 1024      # conservative fallback (v7x per-TC VMEM)


def _plan_tiles(n, c, itemsize_x, itemsize_t, budget_bytes):
    """Pick (row_tile, class_tile, sublane) from a VMEM byte budget."""
    # Native sublane packing: 8 rows for 4-byte, 16 for 2-byte, 32 for 1-byte.
    sub = max(8, 32 // min(itemsize_x, itemsize_t))
    # Per-(row, class) element VMEM footprint: double-buffered inputs plus
    # ~6 live full-width f32 body temporaries (heuristic, budget has headroom).
    per_elem = 2 * (itemsize_x + itemsize_t) + 6 * 4

    # Class-axis tiling only when even a minimal (sublane x full-C) block
    # overflows the budget (vocab-scale C); otherwise keep the whole row.
    if sub * c * per_elem <= budget_bytes:
        tile_c = c
    else:
        tile_c = _round_down(budget_bytes // (sub * per_elem), 128)
        tile_c = max(128, min(tile_c, _round_down(c, 128)))

    rows = budget_bytes // (tile_c * per_elem)
    # Keep >= 2 row tiles when N allows it so the 'parallel' row axis spans
    # both v7x TensorCores (no cost on single-TC v5e/v6e).
    rows = min(rows, _round_up(-(-n // 2), sub))
    rows = max(sub, _round_down(rows, sub))
    return int(rows), int(tile_c), int(sub)


def soft_target_cross_entropy_v2(x, target, mean=True, temp_t=1.0, temp_s=1.0,
                                 row_tile=None, class_tile=None):
    """Matches SoftTargetCrossEntropy_v2.forward for 2-D (N, C) inputs.

    Inputs may be f32 or bf16; all math is done in f32 inside the kernel.
    """
    assert x.shape == target.shape and x.ndim == 2
    n, c = x.shape
    bx = jnp.dtype(x.dtype).itemsize
    bt = jnp.dtype(target.dtype).itemsize

    vmem_cap = _vmem_capacity_bytes()
    rt, tc, sub = _plan_tiles(n, c, bx, bt, budget_bytes=vmem_cap // 2)
    if row_tile is not None:
        rt = max(sub, _round_down(int(row_tile), sub))
    if class_tile is not None:
        tc = int(class_tile)

    num_row_tiles = -(-n // rt)
    num_c_tiles = -(-c // tc)
    need_c_mask = (c % tc) != 0

    kernel = functools.partial(
        _ce_kernel,
        inv_temp_t=1.0 / float(temp_t),
        inv_temp_s=1.0 / float(temp_s),
        c_total=c, tile_c=tc, need_c_mask=bool(need_c_mask))

    vmem_limit = int(min((vmem_cap * 7) // 8, 128 * 1024 * 1024))

    per_row = pl.pallas_call(
        kernel,
        out_shape=jax.ShapeDtypeStruct((n, 1), jnp.float32),
        grid_spec=pltpu.PrefetchScalarGridSpec(
            num_scalar_prefetch=0,
            grid=(num_row_tiles, num_c_tiles),     # class (reduction) axis last
            in_specs=[
                pl.BlockSpec((rt, tc), lambda i, j: (i, j)),
                pl.BlockSpec((rt, tc), lambda i, j: (i, j)),
            ],
            out_specs=pl.BlockSpec((rt, 1), lambda i, j: (i, 0)),
            scratch_shapes=[pltpu.VMEM((rt, 1), jnp.float32)] * 5,
        ),
        compiler_params=pltpu.CompilerParams(
            dimension_semantics=("parallel", "arbitrary"),
            vmem_limit_bytes=vmem_limit),
    )(x, target)

    loss = per_row[:, 0]
    if mean:
        return jnp.mean(loss)
    return loss


def _reference(x, target, mean=True, temp_t=1.0, temp_s=1.0):
    p = jax.nn.softmax(target.astype(jnp.float32) / temp_t, axis=-1)
    logq = jax.nn.log_softmax(x.astype(jnp.float32) / temp_s, axis=-1)
    loss = jnp.sum(-p * logq, axis=-1)
    return jnp.mean(loss) if mean else loss


if __name__ == "__main__":
    key = jax.random.PRNGKey(0)
    k1, k2, k3, k4, k5, k6 = jax.random.split(key, 6)

    # Case 1: f32, default temperatures, auto tiling (2 row tiles of 8).
    N1, C1 = 16, 32
    x1 = jax.random.normal(k1, (N1, C1), dtype=jnp.float32)
    t1 = jax.random.normal(k2, (N1, C1), dtype=jnp.float32)
    out_mean = soft_target_cross_entropy_v2(x1, t1, mean=True)
    out_rows = soft_target_cross_entropy_v2(x1, t1, mean=False)
    jax.block_until_ready((out_mean, out_rows))
    ref_mean = _reference(x1, t1, True)
    ref_rows = _reference(x1, t1, False)
    assert out_rows.shape == (N1,)
    assert jnp.allclose(out_mean, ref_mean, atol=1e-4, rtol=1e-4)
    assert jnp.allclose(out_rows, ref_rows, atol=1e-4, rtol=1e-4)

    # Case 2: bf16 inputs, N not divisible by the (16-aligned) row tile
    # -> grid overhang, no jnp.pad copy; temps != 1.
    N2, C2 = 13, 40
    x2 = jax.random.normal(k3, (N2, C2), dtype=jnp.bfloat16)
    t2 = jax.random.normal(k4, (N2, C2), dtype=jnp.bfloat16)
    o2m = soft_target_cross_entropy_v2(x2, t2, True, temp_t=2.0, temp_s=0.5)
    o2r = soft_target_cross_entropy_v2(x2, t2, False, temp_t=2.0, temp_s=0.5)
    jax.block_until_ready((o2m, o2r))
    r2m = _reference(x2, t2, True, 2.0, 0.5)
    r2r = _reference(x2, t2, False, 2.0, 0.5)
    assert o2r.shape == (N2,)
    assert jnp.allclose(o2m, r2m, atol=1e-4, rtol=1e-4)
    assert jnp.allclose(o2r, r2r, atol=1e-4, rtol=1e-4)

    # Case 3: force the class-tiled online-logsumexp path (C % tile_c != 0
    # -> in-kernel class tail mask; multiple row tiles).
    N3, C3 = 24, 300
    x3 = jax.random.normal(k5, (N3, C3), dtype=jnp.float32)
    t3 = jax.random.normal(k6, (N3, C3), dtype=jnp.float32)
    o3r = soft_target_cross_entropy_v2(x3, t3, mean=False,
                                       row_tile=8, class_tile=128)
    jax.block_until_ready(o3r)
    r3r = _reference(x3, t3, False)
    assert o3r.shape == (N3,)
    assert jnp.allclose(o3r, r3r, atol=1e-4, rtol=1e-4)

    print("KERNEL_OK")
</pallas_src>

<mosaic_0001>
module attributes {stable_mosaic.version = 11 : i64} {
  func.func @_ce_kernel(%arg0: i32, %arg1: i32, %arg2: memref<8x32xf32, #tpu.memory_space<vmem>>, %arg3: memref<8x32xf32, #tpu.memory_space<vmem>>, %arg4: memref<8x1xf32, #tpu.memory_space<vmem>>, %arg5: memref<8x1xf32, #tpu.memory_space<vmem>>, %arg6: memref<8x1xf32, #tpu.memory_space<vmem>>, %arg7: memref<8x1xf32, #tpu.memory_space<vmem>>, %arg8: memref<8x1xf32, #tpu.memory_space<vmem>>, %arg9: memref<8x1xf32, #tpu.memory_space<vmem>>) attributes {dimension_semantics = [#tpu.dimension_semantics<parallel>, #tpu.dimension_semantics<arbitrary>], iteration_bounds = array<i64: 2, 1>, scalar_prefetch = 0 : i64, scratch_operands = 5 : i64, tpu.core_type = #tpu.core_type<tc>, window_params = [{transform_indices = @transform_0, window_bounds = array<i64: 8, 32>}, {transform_indices = @transform_1, window_bounds = array<i64: 8, 32>}, {transform_indices = @transform_2, window_bounds = array<i64: 8, 1>}]} {
    %c0_i32 = arith.constant 0 : i32
    %0 = arith.cmpi eq, %arg1, %c0_i32 : i32
    %1 = arith.extui %0 : i1 to i32
    %c0_i32_0 = arith.constant 0 : i32
    %2 = arith.cmpi ne, %1, %c0_i32_0 : i32
    scf.if %2 {
      %cst_34 = arith.constant 0xFF800000 : f32
      %49 = vector.broadcast %cst_34 : f32 to vector<8x1xf32>
      %c0_35 = arith.constant 0 : index
      %c0_36 = arith.constant 0 : index
      %50 = vector.load %arg5[%c0_35, %c0_36] : memref<8x1xf32, #tpu.memory_space<vmem>>, vector<8x1xf32>
      tpu.vector_store %arg5[%c0_35, %c0_36], %49 {strides = array<i32>} : memref<8x1xf32, #tpu.memory_space<vmem>>, vector<8x1xf32>,
      %cst_37 = arith.constant 0.000000e+00 : f32
      %51 = vector.broadcast %cst_37 : f32 to vector<8x1xf32>
      %c0_38 = arith.constant 0 : index
      %c0_39 = arith.constant 0 : index
      %52 = vector.load %arg6[%c0_38, %c0_39] : memref<8x1xf32, #tpu.memory_space<vmem>>, vector<8x1xf32>
      tpu.vector_store %arg6[%c0_38, %c0_39], %51 {strides = array<i32>} : memref<8x1xf32, #tpu.memory_space<vmem>>, vector<8x1xf32>,
      %cst_40 = arith.constant 0.000000e+00 : f32
      %53 = vector.broadcast %cst_40 : f32 to vector<8x1xf32>
      %c0_41 = arith.constant 0 : index
      %c0_42 = arith.constant 0 : index
      %54 = vector.load %arg7[%c0_41, %c0_42] : memref<8x1xf32, #tpu.memory_space<vmem>>, vector<8x1xf32>
      tpu.vector_store %arg7[%c0_41, %c0_42], %53 {strides = array<i32>} : memref<8x1xf32, #tpu.memory_space<vmem>>, vector<8x1xf32>,
      %cst_43 = arith.constant 0xFF800000 : f32
      %55 = vector.broadcast %cst_43 : f32 to vector<8x1xf32>
      %c0_44 = arith.constant 0 : index
      %c0_45 = arith.constant 0 : index
      %56 = vector.load %arg8[%c0_44, %c0_45] : memref<8x1xf32, #tpu.memory_space<vmem>>, vector<8x1xf32>
      tpu.vector_store %arg8[%c0_44, %c0_45], %55 {strides = array<i32>} : memref<8x1xf32, #tpu.memory_space<vmem>>, vector<8x1xf32>,
      %cst_46 = arith.constant 0.000000e+00 : f32
      %57 = vector.broadcast %cst_46 : f32 to vector<8x1xf32>
      %c0_47 = arith.constant 0 : index
      %c0_48 = arith.constant 0 : index
      %58 = vector.load %arg9[%c0_47, %c0_48] : memref<8x1xf32, #tpu.memory_space<vmem>>, vector<8x1xf32>
      tpu.vector_store %arg9[%c0_47, %c0_48], %57 {strides = array<i32>} : memref<8x1xf32, #tpu.memory_space<vmem>>, vector<8x1xf32>,
    } else {
    }
    %c0 = arith.constant 0 : index
    %c0_1 = arith.constant 0 : index
    %3 = vector.load %arg2[%c0, %c0_1] : memref<8x32xf32, #tpu.memory_space<vmem>>, vector<8x32xf32>
    %c0_2 = arith.constant 0 : index
    %c0_3 = arith.constant 0 : index
    %4 = vector.load %arg3[%c0_2, %c0_3] : memref<8x32xf32, #tpu.memory_space<vmem>>, vector<8x32xf32>
    %c0_4 = arith.constant 0 : index
    %c0_5 = arith.constant 0 : index
    %5 = vector.load %arg5[%c0_4, %c0_5] : memref<8x1xf32, #tpu.memory_space<vmem>>, vector<8x1xf32>
    %cst = arith.constant dense<0xFF800000> : vector<8xf32>
    %6 = vector.multi_reduction <maximumf>, %4, %cst [1] : vector<8x32xf32> to vector<8xf32>
    %7 = vector.shape_cast %6 : vector<8xf32> to vector<8x1xf32>
    %8 = arith.maximumf %5, %7 : vector<8x1xf32>
    %c0_6 = arith.constant 0 : index
    %c0_7 = arith.constant 0 : index
    %9 = vector.load %arg5[%c0_6, %c0_7] : memref<8x1xf32, #tpu.memory_space<vmem>>, vector<8x1xf32>
    %10 = arith.subf %9, %8 : vector<8x1xf32>
    %11 = math.exp %10 : vector<8x1xf32>
    %12 = vector.broadcast %8 : vector<8x1xf32> to vector<8x32xf32>
    %13 = arith.subf %4, %12 : vector<8x32xf32>
    %14 = math.exp %13 : vector<8x32xf32>
    %c0_8 = arith.constant 0 : index
    %c0_9 = arith.constant 0 : index
    %15 = vector.load %arg6[%c0_8, %c0_9] : memref<8x1xf32, #tpu.memory_space<vmem>>, vector<8x1xf32>
    %16 = arith.mulf %11, %15 : vector<8x1xf32>
    %cst_10 = arith.constant dense<0.000000e+00> : vector<8xf32>
    %17 = vector.multi_reduction <add>, %14, %cst_10 [1] : vector<8x32xf32> to vector<8xf32>
    %18 = vector.shape_cast %17 : vector<8xf32> to vector<8x1xf32>
    %19 = arith.addf %16, %18 : vector<8x1xf32>
    %c0_11 = arith.constant 0 : index
    %c0_12 = arith.constant 0 : index
    %20 = vector.load %arg6[%c0_11, %c0_12] : memref<8x1xf32, #tpu.memory_space<vmem>>, vector<8x1xf32>
    tpu.vector_store %arg6[%c0_11, %c0_12], %19 {strides = array<i32>} : memref<8x1xf32, #tpu.memory_space<vmem>>, vector<8x1xf32>,
    %c0_13 = arith.constant 0 : index
    %c0_14 = arith.constant 0 : index
    %21 = vector.load %arg7[%c0_13, %c0_14] : memref<8x1xf32, #tpu.memory_space<vmem>>, vector<8x1xf32>
    %22 = arith.mulf %11, %21 : vector<8x1xf32>
    %23 = arith.mulf %14, %3 : vector<8x32xf32>
    %cst_15 = arith.constant dense<0.000000e+00> : vector<8xf32>
    %24 = vector.multi_reduction <add>, %23, %cst_15 [1] : vector<8x32xf32> to vector<8xf32>
    %25 = vector.shape_cast %24 : vector<8xf32> to vector<8x1xf32>
    %26 = arith.addf %22, %25 : vector<8x1xf32>
    %c0_16 = arith.constant 0 : index
    %c0_17 = arith.constant 0 : index
    %27 = vector.load %arg7[%c0_16, %c0_17] : memref<8x1xf32, #tpu.memory_space<vmem>>, vector<8x1xf32>
    tpu.vector_store %arg7[%c0_16, %c0_17], %26 {strides = array<i32>} : memref<8x1xf32, #tpu.memory_space<vmem>>, vector<8x1xf32>,
    %c0_18 = arith.constant 0 : index
    %c0_19 = arith.constant 0 : index
    %28 = vector.load %arg5[%c0_18, %c0_19] : memref<8x1xf32, #tpu.memory_space<vmem>>, vector<8x1xf32>
    tpu.vector_store %arg5[%c0_18, %c0_19], %8 {strides = array<i32>} : memref<8x1xf32, #tpu.memory_space<vmem>>, vector<8x1xf32>,
    %c0_20 = arith.constant 0 : index
    %c0_21 = arith.constant 0 : index
    %29 = vector.load %arg8[%c0_20, %c0_21] : memref<8x1xf32, #tpu.memory_space<vmem>>, vector<8x1xf32>
    %cst_22 = arith.constant dense<0xFF800000> : vector<8xf32>
    %30 = vector.multi_reduction <maximumf>, %3, %cst_22 [1] : vector<8x32xf32> to vector<8xf32>
    %31 = vector.shape_cast %30 : vector<8xf32> to vector<8x1xf32>
    %32 = arith.maximumf %29, %31 : vector<8x1xf32>
    %c0_23 = arith.constant 0 : index
    %c0_24 = arith.constant 0 : index
    %33 = vector.load %arg8[%c0_23, %c0_24] : memref<8x1xf32, #tpu.memory_space<vmem>>, vector<8x1xf32>
    %34 = arith.subf %33, %32 : vector<8x1xf32>
    %35 = math.exp %34 : vector<8x1xf32>
    %c0_25 = arith.constant 0 : index
    %c0_26 = arith.constant 0 : index
    %36 = vector.load %arg9[%c0_25, %c0_26] : memref<8x1xf32, #tpu.memory_space<vmem>>, vector<8x1xf32>
    %37 = arith.mulf %35, %36 : vector<8x1xf32>
    %38 = vector.broadcast %32 : vector<8x1xf32> to vector<8x32xf32>
    %39 = arith.subf %3, %38 : vector<8x32xf32>
    %40 = math.exp %39 : vector<8x32xf32>
    %cst_27 = arith.constant dense<0.000000e+00> : vector<8xf32>
    %41 = vector.multi_reduction <add>, %40, %cst_27 [1] : vector<8x32xf32> to vector<8xf32>
    %42 = vector.shape_cast %41 : vector<8xf32> to vector<8x1xf32>
    %43 = arith.addf %37, %42 : vector<8x1xf32>
    %c0_28 = arith.constant 0 : index
    %c0_29 = arith.constant 0 : index
    %44 = vector.load %arg9[%c0_28, %c0_29] : memref<8x1xf32, #tpu.memory_space<vmem>>, vector<8x1xf32>
    tpu.vector_store %arg9[%c0_28, %c0_29], %43 {strides = array<i32>} : memref<8x1xf32, #tpu.memory_space<vmem>>, vector<8x1xf32>,
    %c0_30 = arith.constant 0 : index
    %c0_31 = arith.constant 0 : index
    %45 = vector.load %arg8[%c0_30, %c0_31] : memref<8x1xf32, #tpu.memory_space<vmem>>, vector<8x1xf32>
    tpu.vector_store %arg8[%c0_30, %c0_31], %32 {strides = array<i32>} : memref<8x1xf32, #tpu.memory_space<vmem>>, vector<8x1xf32>,
    %c0_i32_32 = arith.constant 0 : i32
    %46 = arith.cmpi eq, %arg1, %c0_i32_32 : i32
    %47 = arith.extui %46 : i1 to i32
    %c0_i32_33 = arith.constant 0 : i32
    %48 = arith.cmpi ne, %47, %c0_i32_33 : i32
    scf.if %48 {
      %c0_34 = arith.constant 0 : index
      %c0_35 = arith.constant 0 : index
      %49 = vector.load %arg8[%c0_34, %c0_35] : memref<8x1xf32, #tpu.memory_space<vmem>>, vector<8x1xf32>
      %c0_36 = arith.constant 0 : index
      %c0_37 = arith.constant 0 : index
      %50 = vector.load %arg9[%c0_36, %c0_37] : memref<8x1xf32, #tpu.memory_space<vmem>>, vector<8x1xf32>
      %51 = math.log %50 : vector<8x1xf32>
      %52 = arith.addf %49, %51 : vector<8x1xf32>
      %c0_38 = arith.constant 0 : index
      %c0_39 = arith.constant 0 : index
      %53 = vector.load %arg7[%c0_38, %c0_39] : memref<8x1xf32, #tpu.memory_space<vmem>>, vector<8x1xf32>
      %c0_40 = arith.constant 0 : index
      %c0_41 = arith.constant 0 : index
      %54 = vector.load %arg6[%c0_40, %c0_41] : memref<8x1xf32, #tpu.memory_space<vmem>>, vector<8x1xf32>
      %55 = arith.divf %53, %54 : vector<8x1xf32>
      %56 = arith.subf %52, %55 : vector<8x1xf32>
      %c0_42 = arith.constant 0 : index
      %c0_43 = arith.constant 0 : index
      %57 = vector.load %arg4[%c0_42, %c0_43] : memref<8x1xf32, #tpu.memory_space<vmem>>, vector<8x1xf32>
      tpu.vector_store %arg4[%c0_42, %c0_43], %56 {strides = array<i32>} : memref<8x1xf32, #tpu.memory_space<vmem>>, vector<8x1xf32>,
    } else {
    }
    return
  }
  func.func @transform_0(%arg0: i32, %arg1: i32) -> (i32, i32) {
    %c0_i32 = arith.constant 0 : i32
    return %arg0, %arg1 : i32, i32
  }
  func.func @transform_1(%arg0: i32, %arg1: i32) -> (i32, i32) {
    %c0_i32 = arith.constant 0 : i32
    return %arg0, %arg1 : i32, i32
  }
  func.func @transform_2(%arg0: i32, %arg1: i32) -> (i32, i32) {
    %c0_i32 = arith.constant 0 : i32
    %c0_i32_0 = arith.constant 0 : i32
    return %arg0, %c0_i32 : i32, i32
  }
}

</mosaic_0001>

<bundles_post_ra>
// kernel: tpu_custom_call.1
= control target key start
LH: loop header
LB: loop body
LE: loop exit
PB: predicated region body
PF: predicated region fallthrough
CT: control target
= control target key end

     0   :  { %7 = vsyncpa [#allocation8], 0  ;;  %s749_s0 = inlined_call_operand.hbm [shape: f32[16,32], index: 0, kind: input, shape index: {}]   ;;  %s750_s1 = inlined_call_operand.hbm [shape: f32[16,32], index: 1, kind: input, shape index: {}]   ;;  %s751_s2 = inlined_call_operand.vmem [shape: f32[16,1], index: 2, kind: output, shape index: {}]  }
   0x1   :  { %9 = vsyncpa [#allocation8 + $0x1], 0 }
   0x2   :  { %10 = vsyncpa [#allocation10], 0 }
   0x3   :  { %12 = vsyncpa [#allocation10 + $0x1], 0  ;;  %s638_s9 = smov 0   ;;  %s640_s10 = smov 0  }
   0x4   :  { %s642_s11 = smov 0   ;;  %s644_s12 = smov 0  }
   0x5   :  { %s646_s13 = smov 0   ;;  %s648_s14 = smov 0  }
   0x6 LB: > { %s413_s15 = sadd.s32 4294967295, %s618_s14   ;;  %s30_s16 = sadd.s32 1, %s614_s13  ;;  %s618_s14 = sphi %s648_s14, %s18_s14   ;;  %s614_s13 = sphi %s646_s13, %s758_s13   ;;  %s610_s12 = sphi %s644_s12, %s757_s12   ;;  %s606_s11 = sphi %s642_s11, %s756_s11   ;;  %s602_s10 = sphi %s640_s10, %s755_s10   ;;  %s598_s9 = sphi %s638_s9, %s754_s9  }
   0x7   : > { %p32_p0 = scmp.ge.s32.totalorder %s30_s16, 2  ;;  %s39_s17 = sadd.s32 1, %s606_s11 }
   0x8   : > { %p46_p1 = scmp.ne.s32.totalorder %s606_s11, %s602_s10  ;;  %p47_p2 = scmp.eq.s32.totalorder %s618_s14, 0 }
   0x9   : > { %s760_s16 = smov (%p32_p0, %s30_s16), 0  ;;  %p52_p4 = scmp.ne.s32.totalorder %s602_s10, %s598_s9 }
   0xa   : > { %p674_p3 = por %p47_p2, %p46_p1  ;;  %s34_s19 = ssub.s32 %s614_s13, %s760_s16 }
   0xb   : > { %p53_p5 = scmp.eq.s32.totalorder %s413_s15, 0  ;;  %p37_p6 = scmp.eq.s32.totalorder %s34_s19, 0 }
   0xc   : > { %p438_p8 = scmp.lt.s32.totalorder %s618_s14, 2  ;;  %s130_s22 = sand.u32 1, %s606_s11  }
   0xd   : > { %p681_p7 = por %p53_p5, %p52_p4  ;;  %s418_s23 = sshll.u32 %s614_s13, 3 }
   0xe   : > { %s687_s21 = scalar_select %p37_p6, %s606_s11, %s39_s17  }
   0xf   : > { %s417_s24 = sshll.u32 %s130_s22, 3  ;;  %s139_s27 = scalar_lea.hbm %s749_s0, %s418_s23 }
  0x10   : > { %s141_s28 = sshll.u32 %s139_s27, 4  ;;  %s134_s29 = scalar_lea.vmem [#allocation7], %s417_s24  ;;  %s142_s28 = int_to_ptr.hbm [resolvable:$true] %s141_s28 }
  0x11   : > { %s143_s30 = sshll.u32 %s134_s29, 4  ;;  %p432_p9 = pnand %p438_p8, %p674_p3  ;;  %s144_s30 = int_to_ptr.vmem [resolvable:$true] %s143_s30 }
  0x12   : > { %p421_p10 = scmp.ge.s32.totalorder %s618_s14, 1  ;;  %p168_p11 = scmp.lt.s32.totalorder %s618_s14, 3 }
  0x13   : > { %s131_s3 = scalar_lea.sflag [#allocation8], %s130_s22  ;;  %s159_s6 = scalar_lea.hbm %s750_s1, %s418_s23 }
  0x14   : > { %434 = dma.hbm_to_vmem [thread:$0]  (!%p432_p9), %s142_s28, 128, %s144_s30, %s131_s3  }
  0x15   : > { %p169_p12 = pnand %p421_p10, %p168_p11  ;;  %s161_s7 = sshll.u32 %s159_s6, 4  ;;  %s162_s7 = int_to_ptr.hbm [resolvable:$true] %s161_s7 }
  0x16   : > { %s154_s8 = scalar_lea.vmem [#allocation9], %s417_s24  ;;  %s151_s15 = scalar_lea.sflag [#allocation10], %s130_s22 }
  0x17   : > { %s163_s9 = sshll.u32 %s154_s8, 4  ;;  %172 = sbr.rel (%p169_p12) target bundleno = 426 (0x1aa), region = 28  ;;  %s164_s9 = int_to_ptr.vmem [resolvable:$true] %s163_s9 }
  0x18   : > { %437 = dma.hbm_to_vmem [thread:$0]  (!%p432_p9), %s162_s7, 128, %s164_s9, %s151_s15  }
  0x19   : > { %s174_s17 = sand.u32 (!%p169_p12), 1, %s602_s10  }
  0x1a   : > { %s422_s18 = sshll.u32 (!%p169_p12), %s174_s17, 3  ;;  %s175_s19 = scalar_lea.sflag (!%p169_p12), [#allocation8], %s174_s17 }
  0x1b   : > { %s178_s25 = scalar_lea.vmem (!%p169_p12), [#allocation7], %s422_s18 }
  0x1c   : > { %589 = dma.done.wait (%p681_p7), %s175_s19, 128  }
  0x1d   : > { %591 = vsyncadd (%p681_p7), %s175_s19, 4294967168  ;;  %s185_s23 = scalar_lea.sflag [#allocation10], %s174_s17  ;;  %s188_s24 = scalar_lea.vmem [#allocation9], %s422_s18 }
  0x1e   : > { %593 = dma.done.wait (%p681_p7), %s185_s23, 128  }
  0x1f   : > { %595 = vsyncadd (%p681_p7), %s185_s23, 4294967168  ;;  %vm222_vm0 = vcmask 7168   ;;  %v620_v0 = vmov -inf   ;;  %vm231_vm1 = vcmask 261120   ;;  %v229_v1 = vld [vmem:[%s188_s24] sm:$0xff]  ;;  %v228_v3 = vld [vmem:[%s178_s25] sm:$0xff] }
  0x20   : > { %223 = vst.msk [vmem:[#allocation2] sm:$0xff] %vm222_vm0, %v620_v0  ;;  %v232_v2 = vsel %vm231_vm1, %v229_v1, -inf  ;;  %v265_v4 = vsel %vm231_vm1, %v228_v3, -inf  ;;  %v621_v5 = vmov 0   ;;  %v622_v6 = vmov 0.0   ;;  %p214_p13 = scmp.lt.s32.totalorder %s610_s12, 1 }
  0x21   : > { %226 = vst.msk [vmem:[#allocation5] sm:$0xff] %vm222_vm0, %v620_v0  ;;  %233 = vmax.xlane.f32.xlu0 %v232_v2  ;;  %490 = vset.pattern.permute.xlu1 %v621_v5 }
  0x22   : > { %491 = vset.pattern.permute.xlu0 %v621_v5  ;;  %224 = vst.msk [vmem:[#allocation3] sm:$0xff] %vm222_vm0, %v622_v6  ;;  %s762_s12 = smov (!%p214_p13, %s610_s12), 1 }
  0x23   : > { %225 = vst.msk [vmem:[#allocation4] sm:$0xff] %vm222_vm0, %v622_v6  ;;  %s424_s20 = sshll.u32 %s762_s12, 3 }
  0x24   : > { %227 = vst.msk [vmem:[#allocation6] sm:$0xff] %vm222_vm0, %v622_v6  ;;  %s217_s27 = scalar_lea.vmem %s751_s2, %s424_s20 }
  0x27   : > { %v230_v7 = vld [vmem:[#allocation2] sm:$0xff] }
  0x28   : > { %v264_v11 = vld [vmem:[#allocation5] sm:$0xff] }
  0x29   : > { %266 = vmax.xlane.f32.xlu0 %v265_v4  ;;  %v247_v30 = vld [vmem:[#allocation3] sm:$0xff] }
  0x2a   : > { %v255_v31 = vld [vmem:[#allocation4] sm:$0xff] }
  0x2b   : > { %v272_v39 = vld [vmem:[#allocation6] sm:$0xff] }
  0x94   : > { %v234_v8 = vpop.xlane.xlu0 %233 }
  0x95   : > { %v235_v9 = vmax.f32 %v230_v7, %v234_v8 }
  0x97   : > { %v236_v10 = vsub.f32 %v230_v7, %v235_v9  ;;  %263 = vst.msk [vmem:[#allocation2] sm:$0xff] %vm222_vm0, %v235_v9  ;;  %241 = vperm.xlu1 %490, %v235_v9  }
  0x99   : > { %v237_v27 = vmul.f32 1.442695, %v236_v10 }
  0x9c   : > { %v267_v12 = vpop.xlane.xlu0 %266 }
  0x9d   : > { %v268_v13 = vmax.f32 %v264_v11, %v267_v12 }
  0x9f   : > { %v269_v14 = vsub.f32 %v264_v11, %v268_v13  ;;  %287 = vst.msk [vmem:[#allocation5] sm:$0xff] %vm222_vm0, %v268_v13  ;;  %276 = vperm.xlu1 %490, %v268_v13  }
  0xa1   : > { %v270_v28 = vmul.f32 1.442695, %v269_v14 }
  0xa6   : > { %v291_v56 = vld [vmem:[#allocation5] sm:$0xff] }
 0x109   : > { %v242_v15 = vpop.permute.xlu1 %241 }
 0x10a   : > { %v244_v16 = vsub.f32 %v229_v1, %v242_v15 }
 0x10c   : > { %v245_v17 = vmul.f32 1.442695, %v244_v16 }
 0x10e   : > { %492 = vpow2.f32 %v245_v17 }
 0x111   : > { %v277_v18 = vpop.permute.xlu1 %276 }
 0x112   : > { %v279_v19 = vsub.f32 %v228_v3, %v277_v18 }
 0x114   : > { %v493_v20 = vpop.eup %492  ;;  %v280_v21 = vmul.f32 1.442695, %v279_v19 }
 0x115   : > { %v249_v22 = vsel %vm231_vm1, %v493_v20, 0.0  ;;  %v257_v23 = vmul.f32 %v493_v20, %v228_v3 }
 0x116   : > { %494 = vpow2.f32 %v280_v21  ;;  %250 = vadd.xlane.f32.xlu2 %v249_v22 }
 0x117   : > { %v258_v24 = vsel %vm231_vm1, %v257_v23, 0.0  ;;  %496 = vpow2.f32 %v237_v27 }
 0x118   : > { %259 = vadd.xlane.f32.xlu0 %v258_v24  ;;  %498 = vpow2.f32 %v270_v28 }
 0x11c   : > { %v495_v25 = vpop.eup %494 }
 0x11d   : > { %v282_v26 = vsel %vm231_vm1, %v495_v25, 0.0  ;;  %v497_v29 = vpop.eup %496 }
 0x11e   : > { %283 = vadd.xlane.f32.xlu2 %v282_v26  ;;  %v248_v32 = vmul.f32 %v497_v29, %v247_v30  ;;  %v256_v35 = vmul.f32 %v497_v29, %v255_v31  ;;  %v499_v38 = vpop.eup %498 }
 0x11f   : > { %v273_v40 = vmul.f32 %v499_v38, %v272_v39 }
 0x189   : > { %v251_v33 = vpop.xlane.xlu2 %250 }
 0x18a   : > { %v252_v34 = vadd.f32 %v251_v33, %v248_v32 }
 0x18b   : > { %v260_v36 = vpop.xlane.xlu0 %259 }
 0x18c   : > { %254 = vst.msk [vmem:[#allocation3] sm:$0xff] %vm222_vm0, %v252_v34  ;;  %v261_v37 = vadd.f32 %v260_v36, %v256_v35 }
 0x18e   : > { %262 = vst.msk [vmem:[#allocation4] sm:$0xff] %vm222_vm0, %v261_v37 }
 0x191   : > { %v284_v41 = vpop.xlane.xlu2 %283 }
 0x192   : > { %v285_v42 = vadd.f32 %v284_v41, %v273_v40 }
 0x193   : > { %v297_v43 = vld [vmem:[#allocation3] sm:$0xff] }
 0x194   : > { %500 = vrcp.f32 %v297_v43  ;;  %286 = vst.msk [vmem:[#allocation6] sm:$0xff] %vm222_vm0, %v285_v42  ;;  %v309_v48 = vand.u32 2147483648, %v297_v43  ;;  %v307_v50 = vand.u32 2147483647, %v297_v43  ;;  %vm303_vm3 = vweird.f32 %v297_v43 }
 0x195   : > { %v296_v57 = vld [vmem:[#allocation4] sm:$0xff] }
 0x196   : > { %v310_v53 = vor.u32 1.1754944e-38, %v309_v48  ;;  %vm308_vm5 = vcmp.eq.f32.partialorder %v307_v50, 8.507059e+37 }
 0x19a   : > { %v501_v44 = vpop.eup %500 }
 0x19b   : > { %v299_v45 = vmul.f32 %v501_v44, %v297_v43  ;;  %v292_v46 = vld [vmem:[#allocation6] sm:$0xff]  ;;  %vm304_vm2 = vweird.f32 %v501_v44 }
 0x19c   : > { %502 = vlog2.f32 %v292_v46  ;;  %vm305_vm4 = vmor %vm303_vm3, %vm304_vm2 }
 0x19d   : > { %v300_v47 = vsub.f32 1.0, %v299_v45 }
 0x19f   : > { %v301_v49 = vmul.f32 %v501_v44, %v300_v47 }
 0x1a1   : > { %v302_v51 = vadd.f32 %v501_v44, %v301_v49 }
 0x1a2   : > { %v503_v52 = vpop.eup %502 }
 0x1a3   : > { %v306_v54 = vsel %vm305_vm4, %v501_v44, %v302_v51  ;;  %v294_v55 = vmul.f32 0.6931472, %v503_v52 }
 0x1a4   : > { %v311_v58 = vsel %vm308_vm5, %v310_v53, %v306_v54 }
 0x1a5   : > { %v312_v59 = vmul.f32 %v311_v58, %v296_v57  ;;  %v295_v60 = vadd.f32 %v294_v55, %v291_v56 }
 0x1a7   : > { %v313_v61 = vsub.f32 %v295_v60, %v312_v59 }
 0x1a9   : > { %314 = vst.msk [vmem:[%s217_s27] sm:$0xff] %vm222_vm0, %v313_v61 }
 0x1aa PF: > { %s18_s14 = sadd.s32 1, %s618_s14   ;;  %s754_s9 = smov %s602_s10 }
 0x1ab   : > { %p15_p0 = scmp.ge.s32.totalorder %s18_s14, 4   ;;  %s755_s10 = smov %s606_s11 }
 0x1ac   : > { %s756_s11 = smov %s687_s21  ;;  %s757_s12 = smov %s614_s13 }
 0x1ad   : > { %s758_s13 = smov %s760_s16  ;;  %17 = sbr.rel (!%p15_p0) target bundleno = 6 (0x6), region = 89 }
 0x1b2   :  { %334 = vsyncpa [#allocation8], 1 }
 0x1b3   :  { %336 = vsyncpa [#allocation8 + $0x1], 1 }
 0x1b4   :  { %337 = vsyncpa [#allocation10], 1 }
 0x1b5   :  { %339 = vsyncpa [#allocation10 + $0x1], 1 }

</bundles_post_ra>
